<compile_context>
chip_gen: v7x
topology: tpu7x:2x2x1
jax: 0.10.0
libtpu: 0.0.40
codegen_flags: <defaults>
</compile_context>

<pallas_src>
import functools

import jax
import jax.numpy as jnp
from jax.experimental import pallas as pl
from jax.experimental.pallas import tpu as pltpu


# Above the 32 MiB scoped default, below every generation's physical cap
# (v7x 64 MiB / v5e-v6e 128 MiB) with headroom.
_VMEM_LIMIT = 48 * 1024 * 1024


# ----------------------------------------------------------------------------
# Patch-embed linear: o = x @ w + b, M-tiled so the activation slab is
# double-buffered (and split across TensorCores on v7x).
#   x: (M, K) f32, w: (K, N) bf16, b: (1, N) f32 -> (M, N) f32
# ----------------------------------------------------------------------------
def _linear_kernel(x_ref, w_ref, b_ref, o_ref):
    o_ref[...] = (
        jnp.dot(x_ref[...].astype(jnp.bfloat16), w_ref[...],
                preferred_element_type=jnp.float32)
        + b_ref[...]
    )


def linear(x2d, w, b):
    M, K = x2d.shape
    N = w.shape[1]
    tm = min(512, M)                       # row tile; degenerates to M when small
    grid = (pl.cdiv(M, tm),)
    return pl.pallas_call(
        _linear_kernel,
        out_shape=jax.ShapeDtypeStruct((M, N), jnp.float32),
        grid=grid,
        in_specs=[
            pl.BlockSpec((tm, K), lambda i: (i, 0)),
            pl.BlockSpec((K, N), lambda i: (0, 0)),
            pl.BlockSpec((1, N), lambda i: (0, 0)),
        ],
        out_specs=pl.BlockSpec((tm, N), lambda i: (i, 0)),
        compiler_params=pltpu.CompilerParams(
            dimension_semantics=("parallel",),
            vmem_limit_bytes=_VMEM_LIMIT,
        ),
    )(x2d, w, b)


# ----------------------------------------------------------------------------
# Fused transformer Block kernel (per-sample):
#   LN1 -> fused QKV matmul -> per-head softmax(QK^T)V -> fused out-proj
#   -> residual -> LN2 -> (identity MLP) -> residual
# Weights are lane-dense: wqkv (D, 3D) bf16 (dp_scale folded into the Q third),
# wp (D, D) bf16, biases f32.
# ----------------------------------------------------------------------------
def _block_kernel(
    x_ref, g1_ref, b1_ref, wqkv_ref, bqkv_ref, wp_ref, bp_ref, g2_ref, b2_ref,
    o_ref, qkv_sc, ctx_sc, *, n_heads, head_dim,
):
    d_model = n_heads * head_dim
    x = x_ref[0]  # (S, D) f32

    # --- LayerNorm 1 (eps=1e-6, biased variance, matches nn.LayerNorm) ---
    mu1 = jnp.mean(x, axis=-1, keepdims=True)
    var1 = jnp.mean(jnp.square(x - mu1), axis=-1, keepdims=True)
    ln1 = (x - mu1) * jax.lax.rsqrt(var1 + 1e-6) * g1_ref[...] + b1_ref[...]

    # --- Fused QKV projection: one lane-dense bf16 MXU matmul, f32 accumulate.
    # dp_scale is already folded into the Q columns of wqkv/bqkv (done at init).
    qkv_sc[...] = (
        jnp.dot(ln1.astype(jnp.bfloat16), wqkv_ref[...],
                preferred_element_type=jnp.float32)
        + bqkv_ref[...]
    )

    # --- Per-head attention (small H; score matmuls are inherently hd-thin).
    # Head slices are read from / written to lane-dense VMEM scratch slabs so
    # the two big projections stay full-width.  Slice starts are static.
    for h in range(n_heads):
        q = qkv_sc[:, pl.ds(h * head_dim, head_dim)]                 # (S, hd)
        k = qkv_sc[:, pl.ds(d_model + h * head_dim, head_dim)]
        v = qkv_sc[:, pl.ds(2 * d_model + h * head_dim, head_dim)]
        # scores = (q*scale) @ k^T   (scale pre-folded), contract over head_dim
        dp = jax.lax.dot_general(
            q, k, (((1,), (1,)), ((), ())), preferred_element_type=jnp.float32
        )
        dp = dp - jnp.max(dp, axis=-1, keepdims=True)
        e = jnp.exp(dp)
        attn = e * pl.reciprocal(jnp.sum(e, axis=-1, keepdims=True), approx=True)
        ctx_sc[:, pl.ds(h * head_dim, head_dim)] = jnp.dot(
            attn, v, preferred_element_type=jnp.float32
        )

    # --- Fused output projection: single (S,D) @ (D,D) bf16 matmul.
    attn_out = (
        jnp.dot(ctx_sc[...].astype(jnp.bfloat16), wp_ref[...],
                preferred_element_type=jnp.float32)
        + bp_ref[...]
    )

    x1 = x + attn_out  # residual 1

    # --- LayerNorm 2 ---
    mu2 = jnp.mean(x1, axis=-1, keepdims=True)
    var2 = jnp.mean(jnp.square(x1 - mu2), axis=-1, keepdims=True)
    ln2 = (x1 - mu2) * jax.lax.rsqrt(var2 + 1e-6) * g2_ref[...] + b2_ref[...]

    # MLP in the reference module is an identity stub -> residual 2 adds ln2.
    o_ref[0] = x1 + ln2


def transformer_block(x, p, *, n_heads):
    B, S, D = x.shape
    head_dim = D // n_heads
    weights = [p["g1"], p["b1"], p["wqkv"], p["bqkv"], p["wp"], p["bp"],
               p["g2"], p["b2"]]

    # Constant-index weight specs: fetched once per pallas_call, held in VMEM
    # across the batch grid.
    # TODO(synk): for real ViT-L/H embed dims on v7x (64 MiB VMEM), single-
    # buffer these constant-index weight specs (pipeline_mode=pl.Buffered(1))
    # or stage them once in persistent VMEM scratch; at toy sizes default
    # buffering is fine.
    def full_spec(a):
        nd = a.ndim
        return pl.BlockSpec(a.shape, lambda b, _nd=nd: (0,) * _nd)

    kern = functools.partial(_block_kernel, n_heads=n_heads, head_dim=head_dim)
    # TODO(synk): for B=1 inference on v7x add a second parallel grid axis over
    # query tiles of S so both TensorCores stay busy.
    return pl.pallas_call(
        kern,
        out_shape=jax.ShapeDtypeStruct((B, S, D), jnp.float32),
        grid=(B,),
        in_specs=[pl.BlockSpec((1, S, D), lambda b: (b, 0, 0))]
        + [full_spec(w) for w in weights],
        out_specs=pl.BlockSpec((1, S, D), lambda b: (b, 0, 0)),
        scratch_shapes=[
            pltpu.VMEM((S, 3 * D), jnp.float32),   # fused qkv slab
            pltpu.VMEM((S, D), jnp.float32),       # concatenated head outputs
        ],
        compiler_params=pltpu.CompilerParams(
            dimension_semantics=("parallel",),
            vmem_limit_bytes=_VMEM_LIMIT,
        ),
    )(x, *weights)


# ----------------------------------------------------------------------------
# Head kernel: final LayerNorm (per-token, so applying it to the cls token
# alone is numerically identical to the reference's norm-then-select),
# classifier linear, softmax (eval mode).  The class dim is padded to a
# multiple of 128 lanes; padded columns have weight 0 and bias -1e30 so they
# contribute ~0 to the softmax denominator, and are sliced off outside.
# ----------------------------------------------------------------------------
def _head_kernel(cls_ref, g_ref, b_ref, w_ref, bh_ref, o_ref):
    x = cls_ref[...]  # (B, D) f32
    mu = jnp.mean(x, axis=-1, keepdims=True)
    var = jnp.mean(jnp.square(x - mu), axis=-1, keepdims=True)
    ln = (x - mu) * jax.lax.rsqrt(var + 1e-6) * g_ref[...] + b_ref[...]
    logits = (
        jnp.dot(ln.astype(jnp.bfloat16), w_ref[...],
                preferred_element_type=jnp.float32)
        + bh_ref[...]
    )
    m = jnp.max(logits, axis=-1, keepdims=True)
    e = jnp.exp(logits - m)
    o_ref[...] = e * pl.reciprocal(jnp.sum(e, axis=-1, keepdims=True), approx=True)


def head(cls_tok, g, b, w, bh):
    B, D = cls_tok.shape
    n_pad = w.shape[1]
    return pl.pallas_call(
        _head_kernel,
        out_shape=jax.ShapeDtypeStruct((B, n_pad), jnp.float32),
        grid=(1,),
        in_specs=[
            pl.BlockSpec((B, D), lambda i: (0, 0)),
            pl.BlockSpec((1, D), lambda i: (0, 0)),
            pl.BlockSpec((1, D), lambda i: (0, 0)),
            pl.BlockSpec((D, n_pad), lambda i: (0, 0)),
            pl.BlockSpec((1, n_pad), lambda i: (0, 0)),
        ],
        out_specs=pl.BlockSpec((B, n_pad), lambda i: (0, 0)),
        compiler_params=pltpu.CompilerParams(vmem_limit_bytes=_VMEM_LIMIT),
    )(cls_tok, g, b, w, bh)


# ----------------------------------------------------------------------------
# Glue: patch extraction (equivalent to Conv2d(k=p, stride=p) flattening).
# Done in host JAX (pure HBM relayout; XLA handles it well).
# ----------------------------------------------------------------------------
def patchify(x, p):
    # x: (B, C, H, W) NCHW
    B, C, H, W = x.shape
    gh, gw = H // p, W // p
    x = x.reshape(B, C, gh, p, gw, p)
    x = x.transpose(0, 2, 4, 1, 3, 5)  # (B, gh, gw, C, p, p)
    return x.reshape(B, gh * gw, C * p * p)


# ----------------------------------------------------------------------------
# Parameter init (deterministic).  Matmul weights are stored lane-dense and
# bf16; biases / LN params are f32.  The attention dp_scale is folded into the
# Q third of the fused QKV weight and bias (free at init time).
# ----------------------------------------------------------------------------
def init_params(key, *, in_channels, patch_size, embed_dim, n_heads, n_blocks,
                n_classes, n_patches):
    hd = embed_dim // n_heads
    scale = float(hd) ** -0.5
    cpp = in_channels * patch_size * patch_size
    n_cls_pad = ((n_classes + 127) // 128) * 128
    keys = list(jax.random.split(key, 6 + 4 * n_blocks))
    it = iter(keys)

    def nrm(shape):
        return 0.02 * jax.random.normal(next(it), shape, jnp.float32)

    head_w = nrm((embed_dim, n_classes))
    head_b = nrm((1, n_classes))
    head_w_pad = (
        jnp.zeros((embed_dim, n_cls_pad), jnp.float32).at[:, :n_classes].set(head_w)
    )
    head_b_pad = (
        jnp.full((1, n_cls_pad), -1e30, jnp.float32).at[:, :n_classes].set(head_b)
    )

    params = dict(
        pe_w=nrm((cpp, embed_dim)).astype(jnp.bfloat16),  # conv proj as matmul
        pe_b=nrm((1, embed_dim)),
        cls_token=nrm((1, 1, embed_dim)),
        pos_embed=nrm((1, 1 + n_patches, embed_dim)),
        norm_g=jnp.ones((1, embed_dim), jnp.float32),
        norm_b=jnp.zeros((1, embed_dim), jnp.float32),
        head_w=head_w_pad.astype(jnp.bfloat16),
        head_b=head_b_pad,
        blocks=[],
    )
    for _ in range(n_blocks):
        wqkv = nrm((embed_dim, 3 * embed_dim))
        bqkv = nrm((1, 3 * embed_dim))
        # Fold dp_scale into the Q projection (columns [0, D)).
        wqkv = wqkv.at[:, :embed_dim].multiply(scale)
        bqkv = bqkv.at[:, :embed_dim].multiply(scale)
        blk = dict(
            g1=jnp.ones((1, embed_dim), jnp.float32),
            b1=jnp.zeros((1, embed_dim), jnp.float32),
            wqkv=wqkv.astype(jnp.bfloat16),
            bqkv=bqkv,
            wp=nrm((embed_dim, embed_dim)).astype(jnp.bfloat16),
            bp=nrm((1, embed_dim)),
            g2=jnp.ones((1, embed_dim), jnp.float32),
            b2=jnp.zeros((1, embed_dim), jnp.float32),
        )
        params["blocks"].append(blk)
    return params


# ----------------------------------------------------------------------------
# Full ViT forward.
# ----------------------------------------------------------------------------
def vit_forward(x, params, *, patch_size, n_heads, n_classes):
    B = x.shape[0]
    patches = patchify(x, patch_size)                 # (B, P, C*p*p)
    _, P, cpp = patches.shape
    E = params["pe_w"].shape[1]

    emb = linear(patches.reshape(B * P, cpp), params["pe_w"], params["pe_b"])
    emb = emb.reshape(B, P, E)                        # (B, P, E)

    cls = jnp.broadcast_to(params["cls_token"], (B, 1, E))
    tok = jnp.concatenate([cls, emb], axis=1) + params["pos_embed"]  # (B, S, E)

    for blk in params["blocks"]:
        tok = transformer_block(tok, blk, n_heads=n_heads)

    cls_final = tok[:, 0, :]                          # (B, E)
    probs_pad = head(cls_final, params["norm_g"], params["norm_b"],
                     params["head_w"], params["head_b"])
    return probs_pad[:, :n_classes]                   # drop lane padding


if __name__ == "__main__":
    B, C, IMG, PATCH = 2, 3, 16, 8
    EMBED, HEADS, BLOCKS, CLASSES = 128, 4, 2, 10
    N_PATCHES = (IMG // PATCH) ** 2                   # 4 -> seq len 5

    key = jax.random.PRNGKey(0)
    kx, kp = jax.random.split(key)
    x = jax.random.normal(kx, (B, C, IMG, IMG), jnp.float32)
    params = init_params(
        kp, in_channels=C, patch_size=PATCH, embed_dim=EMBED, n_heads=HEADS,
        n_blocks=BLOCKS, n_classes=CLASSES, n_patches=N_PATCHES,
    )

    out = vit_forward(x, params, patch_size=PATCH, n_heads=HEADS,
                      n_classes=CLASSES)
    out = jax.block_until_ready(out)
    assert out.shape == (B, CLASSES)
    assert bool(jnp.all(jnp.isfinite(out)))
    print("KERNEL_OK")
</pallas_src>

<mosaic_0001>
module attributes {stable_mosaic.version = 11 : i64} {
  func.func @_linear_kernel(%arg0: i32, %arg1: memref<8x192xf32, #tpu.memory_space<vmem>>, %arg2: memref<192x128xbf16, #tpu.memory_space<vmem>>, %arg3: memref<1x128xf32, #tpu.memory_space<vmem>>, %arg4: memref<8x128xf32, #tpu.memory_space<vmem>>) attributes {dimension_semantics = [#tpu.dimension_semantics<parallel>], iteration_bounds = array<i64: 1>, scalar_prefetch = 0 : i64, scratch_operands = 0 : i64, tpu.core_type = #tpu.core_type<tc>, window_params = [{transform_indices = @transform_0, window_bounds = array<i64: 8, 192>}, {pipeline_mode = #tpu.pipeline_mode<synchronous>, transform_indices = @transform_1, window_bounds = array<i64: 192, 128>}, {pipeline_mode = #tpu.pipeline_mode<synchronous>, transform_indices = @transform_2, window_bounds = array<i64: 1, 128>}, {transform_indices = @transform_3, window_bounds = array<i64: 8, 128>}]} {
    %c0 = arith.constant 0 : index
    %c0_0 = arith.constant 0 : index
    %0 = vector.load %arg1[%c0, %c0_0] : memref<8x192xf32, #tpu.memory_space<vmem>>, vector<8x192xf32>
    %1 = arith.truncf %0 : vector<8x192xf32> to vector<8x192xbf16>
    %c0_1 = arith.constant 0 : index
    %c0_2 = arith.constant 0 : index
    %2 = vector.load %arg2[%c0_1, %c0_2] : memref<192x128xbf16, #tpu.memory_space<vmem>>, vector<192x128xbf16>
    %cst = arith.constant dense<0.000000e+00> : vector<8x128xf32>
    %3 = tpu.matmul %1, %2, %cst {dimension_numbers = #tpu.dot_dimension_numbers<[1], [0], [0], [1], [0, 0, 1, 1], [], []>} : vector<8x192xbf16>, vector<192x128xbf16>, vector<8x128xf32> -> vector<8x128xf32>
    %c0_3 = arith.constant 0 : index
    %c0_4 = arith.constant 0 : index
    %4 = vector.load %arg3[%c0_3, %c0_4] : memref<1x128xf32, #tpu.memory_space<vmem>>, vector<1x128xf32>
    %5 = vector.broadcast %4 : vector<1x128xf32> to vector<8x128xf32>
    %6 = arith.addf %3, %5 : vector<8x128xf32>
    %c0_5 = arith.constant 0 : index
    %c0_6 = arith.constant 0 : index
    %7 = vector.load %arg4[%c0_5, %c0_6] : memref<8x128xf32, #tpu.memory_space<vmem>>, vector<8x128xf32>
    tpu.vector_store %arg4[%c0_5, %c0_6], %6 {strides = array<i32>} : memref<8x128xf32, #tpu.memory_space<vmem>>, vector<8x128xf32>,
    return
  }
  func.func @transform_0(%arg0: i32) -> (i32, i32) {
    %c0_i32 = arith.constant 0 : i32
    %c0_i32_0 = arith.constant 0 : i32
    return %arg0, %c0_i32 : i32, i32
  }
  func.func @transform_1(%arg0: i32) -> (i32, i32) {
    %c0_i32 = arith.constant 0 : i32
    %c0_i32_0 = arith.constant 0 : i32
    %c0_i32_1 = arith.constant 0 : i32
    return %c0_i32, %c0_i32_0 : i32, i32
  }
  func.func @transform_2(%arg0: i32) -> (i32, i32) {
    %c0_i32 = arith.constant 0 : i32
    %c0_i32_0 = arith.constant 0 : i32
    %c0_i32_1 = arith.constant 0 : i32
    return %c0_i32, %c0_i32_0 : i32, i32
  }
  func.func @transform_3(%arg0: i32) -> (i32, i32) {
    %c0_i32 = arith.constant 0 : i32
    %c0_i32_0 = arith.constant 0 : i32
    return %arg0, %c0_i32 : i32, i32
  }
}

</mosaic_0001>

<bundles_post_ra>
// kernel: tpu_custom_call.1
= control target key start
LH: loop header
LB: loop body
LE: loop exit
PB: predicated region body
PF: predicated region fallthrough
CT: control target
= control target key end

     0   :  { %8 = vsyncpa [#allocation3], 0  ;;  %s386_s0 = inlined_call_operand.hbm [shape: f32[8,192], index: 0, kind: input, shape index: {}]   ;;  %s387_s1 = inlined_call_operand.hbm [shape: bf16[192,128], index: 1, kind: input, shape index: {}]   ;;  %s388_s2 = inlined_call_operand.vmem [shape: f32[1,128], index: 2, kind: input, shape index: {}]   ;;  %s389_s3 = inlined_call_operand.hbm [shape: f32[8,128], index: 3, kind: output, shape index: {}]  }
   0x1   :  { %9 = vsyncpa [#allocation6], 0 }
   0x2   :  { %10 = vsyncpa [#allocation4], 0  ;;  %s314_s12 = smov [#allocation2]   ;;  %s315_s14 = smov [#allocation5]  }
   0x3   :  { %s17_s13 = sshll.u32 %s314_s12, 4  ;;  %s26_s15 = sshll.u32 %s315_s14, 4  ;;  %s18_s13 = int_to_ptr.vmem [resolvable:$true] %s17_s13  ;;  %s340_s15 = int_to_ptr.vmem [resolvable:$true] %s26_s15 }
   0x4   :  { %s242_s18 = scalar_lea.hbm %s386_s0, 256 }
   0x5   :  { %p243_p0 = scmp.ne.s32.totalorder %s386_s0, %s242_s18  ;;  %p246_p1 = scmp.lt.u32.totalorder %s242_s18, %s386_s0 }
   0x7   :  { %p248_p2 = pnand %p246_p1, %p243_p0 }
   0x9   :  { %251 = shalt.err (!%p248_p2)
}
   0xa   :  { %s252_s23 = scalar_lea.vmem %s18_s13, 256  ;;  %p257_p4 = scmp.lt.s32.totalorder %s18_s13, %s18_s13 }
   0xb   :  { %p253_p3 = scmp.ne.s32.totalorder %s18_s13, %s252_s23  ;;  %p258_p5 = scmp.lt.s32.totalorder %s252_s23, %s252_s23 }
   0xd   :  { %p259_p6 = por %p258_p5, %p257_p4 }
   0xf   :  { %p260_p7 = pnand %p259_p6, %p253_p3 }
  0x11   :  { %263 = shalt.err (!%p260_p7)
}
  0x12   :  { %20 = dma.hbm_to_vmem [thread:$0]  %s386_s0, 256, %s18_s13, [#allocation3]  }
  0x13   :  { %s264_s28 = scalar_lea.hbm %s387_s1, 1536 }
  0x14   :  { %p265_p8 = scmp.ne.s32.totalorder %s387_s1, %s264_s28  ;;  %p268_p9 = scmp.lt.u32.totalorder %s264_s28, %s387_s1 }
  0x16   :  { %p270_p10 = pnand %p268_p9, %p265_p8 }
  0x18   :  { %273 = shalt.err (!%p270_p10)
}
  0x19   :  { %s274_s6 = scalar_lea.vmem %s340_s15, 1536  ;;  %p279_p12 = scmp.lt.s32.totalorder %s340_s15, %s340_s15 }
  0x1a   :  { %p275_p11 = scmp.ne.s32.totalorder %s340_s15, %s274_s6  ;;  %p280_p13 = scmp.lt.s32.totalorder %s274_s6, %s274_s6 }
  0x1c   :  { %p281_p0 = por %p280_p13, %p279_p12 }
  0x1e   :  { %p282_p1 = pnand %p281_p0, %p275_p11 }
  0x20   :  { %285 = shalt.err (!%p282_p1)
}
  0x21   :  { %s316_s0 = smov 64   ;;  %s317_s7 = smov 4  }
  0x22   :  { %32 = dma.hbm_to_vmem [thread:$0]  %s387_s1, 1536, %s340_s15, [#allocation6], %s316_s0, %s316_s0, %s317_s7  }
  0x23   :  { %308 = dma.done.wait [#allocation3], 256  }
  0x24   :  { %309 = vsyncadd [#allocation3], 4294967040 }
  0x25   :  { %310 = dma.done.wait [#allocation6], 1536  }
  0x26   :  { %311 = vsyncadd [#allocation6], 4294965760  ;;  %v318_v0 = vmov 0   ;;  %v230_v1 = vld [vmem:[#allocation5] sm:$0xff]   ;;  %v231_v2 = vld [vmem:[#allocation5 + $0x8] sm:$0xff]   ;;  %vm149_vm0 = vcmask 523264  }
  0x27   :  { %153 = vmatprep.subr.bf16.mxu0 %v318_v0  ;;  %v232_v3 = vld [vmem:[#allocation5 + $0x10] sm:$0xff]   ;;  %v233_v4 = vld [vmem:[#allocation5 + $0x18] sm:$0xff]   ;;  %v234_v7 = vld [vmem:[#allocation5 + $0x20] sm:$0xff]   ;;  %s319_s11 = smov [#allocation7]  }
  0x28   :  { %154 = vmatpush1.bf16.msra.mxu0 %v230_v1  ;;  %v43_v5 = vld [vmem:[#allocation2 + $0x8] sm:$0xff]  ;;  %v235_v8 = vld [vmem:[#allocation5 + $0x28] sm:$0xff]   ;;  %v236_v9 = vld [vmem:[#allocation5 + $0x30] sm:$0xff]   ;;  %s200_s12 = sshll.u32 %s319_s11, 4  ;;  %s201_s12 = int_to_ptr.vmem [resolvable:$true] %s200_s12 }
  0x29   :  { %155 = vmatprep.subr.bf16.mxu0 %v318_v0  ;;  %v45_v6 = vpack.c.bf16 %v43_v5, %v43_v5  ;;  %v237_v10 = vld [vmem:[#allocation5 + $0x38] sm:$0xff]   ;;  %v238_v11 = vld [vmem:[#allocation5 + $0x40] sm:$0xff]   ;;  %v239_v12 = vld [vmem:[#allocation5 + $0x48] sm:$0xff]   ;;  %s286_s13 = scalar_lea.vmem %s201_s12, 128  ;;  %p291_p3 = scmp.lt.s32.totalorder %s201_s12, %s201_s12 }
  0x2a   :  { %v240_v13 = vld [vmem:[#allocation5 + $0x50] sm:$0xff]   ;;  %v241_v14 = vld [vmem:[#allocation5 + $0x58] sm:$0xff]   ;;  %p287_p2 = scmp.ne.s32.totalorder %s201_s12, %s286_s13  ;;  %p292_p4 = scmp.lt.s32.totalorder %s286_s13, %s286_s13 }
  0x2b   :  { %223 = vmatprep.mubr.msk.bf16.mxu0 %vm149_vm0, %v45_v6  ;;  %v42_v15 = vld [vmem:[#allocation2] sm:$0xff] }
  0x2c   :  { %156 = vmatpush1.bf16.msra.mxu0 %v231_v2  ;;  %v44_v16 = vpack.c.bf16 %v42_v15, %v42_v15  ;;  %v210_v17 = vld [vmem:[%s388_s2] ss:$0 sm:$0xff]  ;;  %p293_p5 = por %p292_p4, %p291_p3 }
  0x2d   :  { %157 = vmatprep.subr.bf16.mxu0 %v318_v0 }
  0x2e   :  { %p294_p6 = pnand %p293_p5, %p287_p2 }
  0x30   :  { %158 = vmatpush1.bf16.msra.mxu0 %v232_v3 }
  0x31   :  { %159 = vmatprep.subr.bf16.mxu0 %v318_v0 }
  0x34   :  { %160 = vmatpush1.bf16.msra.mxu0 %v233_v4 }
  0x35   :  { %161 = vmatprep.subr.bf16.mxu0 %v318_v0 }
  0x38   :  { %162 = vmatpush1.bf16.msra.mxu0 %v234_v7 }
  0x39   :  { %163 = vmatprep.subr.bf16.mxu0 %v318_v0 }
  0x3c   :  { %164 = vmatpush1.bf16.msra.mxu0 %v235_v8 }
  0x3d   :  { %165 = vmatprep.subr.bf16.mxu0 %v318_v0 }
  0x40   :  { %166 = vmatpush1.bf16.msra.mxu0 %v236_v9 }
  0x41   :  { %167 = vmatprep.subr.bf16.mxu0 %v318_v0 }
  0x44   :  { %168 = vmatpush1.bf16.msra.mxu0 %v237_v10 }
  0x45   :  { %169 = vmatprep.subr.bf16.mxu0 %v318_v0 }
  0x48   :  { %170 = vmatpush1.bf16.msra.mxu0 %v238_v11 }
  0x49   :  { %171 = vmatprep.subr.bf16.mxu0 %v318_v0 }
  0x4c   :  { %172 = vmatpush1.bf16.msra.mxu0 %v239_v12 }
  0x4d   :  { %173 = vmatprep.subr.bf16.mxu0 %v318_v0 }
  0x50   :  { %174 = vmatpush1.bf16.msra.mxu0 %v240_v13 }
  0x51   :  { %175 = vmatprep.subr.bf16.mxu0 %v318_v0 }
  0x54   :  { %176 = vmatpush1.bf16.msra.mxu0 %v241_v14 }
  0x57   :  { %186 = vmatmul.mubr.bf16.vlgmr.msra.gmra.mrb[0].mxu0 %v44_v16 }
 0x12a   :  { %v187_v18 = vpop.f32.mrb[0].mxu0 }
 0x12b   :  { %v188_v19 = vadd.f32 %v210_v17, %v187_v18  ;;  %v189_v20 = vpop.f32.mrb[1].mxu0 }
 0x12c   :  { %v190_v21 = vpop.f32.mrb[2].mxu0 }
 0x12d   :  { %193 = vst [vmem:[#allocation7] sm:$0xff] %v188_v19  ;;  %v191_v22 = vpop.f32.mrb[3].mxu0 }
 0x12e   :  { %297 = shalt.err (!%p294_p6)
}
 0x12f   :  { %s298_s2 = scalar_lea.hbm %s389_s3, 128 }
 0x130   :  { %p299_p7 = scmp.ne.s32.totalorder %s389_s3, %s298_s2  ;;  %p302_p8 = scmp.lt.u32.totalorder %s298_s2, %s389_s3 }
 0x132   :  { %p304_p9 = pnand %p302_p8, %p299_p7 }
 0x134   :  { %307 = shalt.err (!%p304_p9)
}
 0x135   :  { %203 = dma.vmem_to_hbm [thread:$0]  %s201_s12, 128, %s389_s3, [#allocation4]  }
 0x136   :  { %312 = dma.done.wait [#allocation4], 128  }
 0x137   :  { %313 = vsyncadd [#allocation4], 4294967168 }
 0x138   :  { %207 = vsyncpa [#allocation3], 1 }
 0x139   :  { %208 = vsyncpa [#allocation6], 1 }
 0x13a   :  { %209 = vsyncpa [#allocation4], 1 }

</bundles_post_ra>
